<compile_context>
chip_gen: v7x
topology: tpu7x:2x2x1
jax: 0.10.0
libtpu: 0.0.40
codegen_flags: <defaults>
</compile_context>

<pallas_src>
import functools

import jax
import jax.numpy as jnp
from jax.experimental import pallas as pl
from jax.experimental.pallas import tpu as pltpu


def _round_up(x, m):
    return ((x + m - 1) // m) * m


def _custom_loss_kernel(yp_ref, yt_ref, out_ref, sse_acc, reg_acc, *,
                        weight, threshold, inv_n, inv_b, B, TB,
                        tiles_per_split):
    c = pl.program_id(0)          # batch split (parallel axis)
    j = pl.program_id(1)          # tile within split (reduction axis)
    n_inner = pl.num_programs(1)

    @pl.when(j == 0)
    def _init():
        sse_acc[...] = jnp.zeros_like(sse_acc)
        reg_acc[...] = jnp.zeros_like(reg_acc)

    yp = yp_ref[...].astype(jnp.float32)          # (TB, D)
    yt = yt_ref[...].astype(jnp.float32)          # (TB, D)
    D = yp.shape[1]

    # Global (unclamped) row ids for this logical block.  Blocks whose rows
    # lie entirely past B are clamped in the index_map to re-read a valid
    # block; this mask zeroes their contribution (and the ragged tail's).
    blk = c * tiles_per_split + j
    row_ids = blk * TB + jax.lax.broadcasted_iota(jnp.int32, (TB, 1), 0)
    valid = row_ids < B                            # (TB, 1) bool

    # --- squared error: fold TB rows into an (8, D) partial (pure VPU adds) --
    diff = yp - yt
    sq = jnp.where(valid, diff * diff, 0.0)        # garbage/NaN padding killed
    sse_acc[...] += jnp.sum(sq.reshape(TB // 8, 8, D), axis=0)

    # --- per-row regularization (row reductions stay inside this block) -----
    row_sum = jnp.sum(yp, axis=1, keepdims=True)               # (TB, 1)
    row_max_abs = jnp.max(jnp.abs(yp), axis=1, keepdims=True)  # (TB, 1)
    reg = (row_sum - jnp.float32(100.0)) ** 2                  # (TB, 1)
    # is_near_zero == all(|yp| < thr, dim=1) == max|yp| < thr; keep = NOT near-zero
    keep = jnp.logical_and(row_max_abs >= jnp.float32(threshold), valid)
    regs = jnp.where(keep, reg, jnp.zeros_like(reg))           # (TB, 1)
    reg_acc[...] += jnp.sum(regs.reshape(TB // 8, 8, 1), axis=0)

    # --- finalize this split: one cross-lane reduce + scalar combine ---------
    @pl.when(j == n_inner - 1)
    def _finalize():
        sse = jnp.sum(sse_acc[...])
        reg_sum = jnp.sum(reg_acc[...])
        # Each split scales ONLY its own partial sums; the wrapper sums the
        # per-split scalars, so the normalization is applied exactly once.
        partial = (sse * jnp.float32(inv_n)
                   + jnp.float32(weight) * reg_sum * jnp.float32(inv_b))
        out_ref[...] = partial.reshape(1, 1, 1)


def _hw_config():
    """Pick (per-input block budget, vmem limit, vmem physical cap, splits)."""
    kind = ""
    try:
        kind = jax.devices()[0].device_kind.lower()
    except Exception:
        pass
    is_v7 = ("v7" in kind) or ("7x" in kind)

    vmem_cap = None
    try:
        vmem_cap = int(pltpu.get_tpu_info().vmem_capacity_bytes)
    except Exception:
        vmem_cap = None
    if vmem_cap is None:
        vmem_cap = (64 << 20) if is_v7 else (128 << 20)

    if is_v7:
        # 64 MiB physical VMEM / 2 TCs: ~6 MiB per input block -> ~24 MiB
        # double-buffered footprint; split batch across the two TensorCores.
        block_budget = 6 << 20
        vmem_limit = 40 << 20
        splits = 2
    else:
        # v5e / v6e: 128 MiB physical VMEM, single TensorCore.
        block_budget = 12 << 20
        vmem_limit = 64 << 20
        splits = 1

    vmem_cap_limit = max(16 << 20, vmem_cap - (8 << 20))  # headroom for compiler
    return block_budget, vmem_limit, vmem_cap_limit, splits


def custom_loss(y_pred, y_true, *, weight=0.01, threshold=1.0,
                stream_bf16=False, num_splits=None, max_rows_per_tile=None):
    """Pallas TPU implementation of CustomLoss.forward. Returns a scalar."""
    assert y_pred.shape == y_true.shape and y_pred.ndim == 2
    B, D = y_pred.shape

    if stream_bf16:
        # Optional: halve bytes on the wire (slightly changes numerics).
        y_pred = y_pred.astype(jnp.bfloat16)
        y_true = y_true.astype(jnp.bfloat16)

    itemsize = max(jnp.dtype(y_pred.dtype).itemsize,
                   jnp.dtype(y_true.dtype).itemsize)

    block_budget, vmem_limit, vmem_cap_limit, hw_splits = _hw_config()
    splits = hw_splits if num_splits is None else max(1, int(num_splits))

    # Rows per block: largest multiple of 8 whose (TB, D) input block fits the
    # per-input budget, clamped to what the batch actually needs.
    tb = block_budget // (D * itemsize)
    tb = max(8, (tb // 8) * 8)
    if max_rows_per_tile is not None:
        tb = min(tb, max(8, _round_up(max_rows_per_tile, 8)))
    tb = min(tb, _round_up(B, 8))

    n_blocks = pl.cdiv(B, tb)
    splits = max(1, min(splits, n_blocks))
    tiles_per_split = pl.cdiv(n_blocks, splits)
    clamp_needed = splits * tiles_per_split > n_blocks

    # Scoped-VMEM limit: 2 inputs x 2 pipeline buffers + resident accumulators,
    # capped below physical VMEM for the detected generation.
    footprint = 4 * tb * D * itemsize + 8 * D * 4 + 4096
    vmem_limit = int(min(max(vmem_limit, footprint + (2 << 20)), vmem_cap_limit))
    # TODO(synk): for extremely wide D (a single (8, D) block exceeding VMEM),
    # add a second grid axis over D with (TB, 1) row-partial scratch for
    # row_sum / row_max instead of requiring full D per block.

    def row_map(c, j):
        blk = c * tiles_per_split + j
        if clamp_needed:
            blk = jnp.minimum(blk, n_blocks - 1)
        return (blk, 0)

    kernel = functools.partial(
        _custom_loss_kernel,
        weight=float(weight),
        threshold=float(threshold),
        inv_n=1.0 / float(B * D),      # exact Python reciprocals: no in-kernel div
        inv_b=1.0 / float(B),
        B=B,
        TB=tb,
        tiles_per_split=tiles_per_split,
    )

    cost = pl.CostEstimate(
        flops=8 * B * D,
        transcendentals=0,
        bytes_accessed=2 * B * D * itemsize + 4 * splits,
    )

    out = pl.pallas_call(
        kernel,
        out_shape=jax.ShapeDtypeStruct((splits, 1, 1), jnp.float32),
        grid_spec=pltpu.PrefetchScalarGridSpec(
            num_scalar_prefetch=0,
            grid=(splits, tiles_per_split),
            in_specs=[
                pl.BlockSpec((tb, D), row_map),
                pl.BlockSpec((tb, D), row_map),
            ],
            out_specs=pl.BlockSpec((1, 1, 1), lambda c, j: (c, 0, 0)),
            scratch_shapes=[
                pltpu.VMEM((8, D), jnp.float32),   # SSE partial accumulator
                pltpu.VMEM((8, 1), jnp.float32),   # sum(regs) partial accumulator
            ],
        ),
        compiler_params=pltpu.CompilerParams(
            dimension_semantics=("parallel", "arbitrary"),
            vmem_limit_bytes=vmem_limit,
        ),
        cost_estimate=cost,
    )(y_pred, y_true)                 # native dtype on the wire; f32 in-kernel

    return jnp.sum(out)               # sum per-split partial scalars


def _reference_loss(y_pred, y_true, weight=0.01, threshold=1.0):
    """Plain-JAX reference mirroring the PyTorch module exactly."""
    yp = y_pred.astype(jnp.float32)
    yt = y_true.astype(jnp.float32)
    mse = jnp.mean((yp - yt) ** 2)
    is_near_zero = jnp.all(jnp.abs(yp) < threshold, axis=1)
    reg = (jnp.sum(yp, axis=1) - 100.0) ** 2
    regs = jnp.where(is_near_zero, jnp.zeros_like(reg), reg)
    return mse + weight * jnp.mean(regs)


if __name__ == "__main__":
    key = jax.random.PRNGKey(0)
    k1, k2, k3, k4 = jax.random.split(key, 4)

    # Case 1: single tile, (sublane, lane)-aligned shapes, hardware-default split.
    B1, D1 = 8, 128
    yp1 = jax.random.normal(k1, (B1, D1), dtype=jnp.float32) * 2.0
    # Make a couple of rows "near zero" so the `where` branch is exercised.
    yp1 = yp1.at[0].set(yp1[0] * 0.05)
    yp1 = yp1.at[3].set(yp1[3] * 0.02)
    yt1 = jax.random.normal(k2, (B1, D1), dtype=jnp.float32) * 2.0

    out1 = jax.block_until_ready(custom_loss(yp1, yt1, weight=0.01, threshold=1.0))
    ref1 = _reference_loss(yp1, yt1, weight=0.01, threshold=1.0)
    assert jnp.allclose(out1, ref1, rtol=1e-5, atol=1e-5), (out1, ref1)

    # Case 2: multi-tile grid with a ragged last tile (cross-step accumulation
    # in the VMEM scratch + out-of-bounds row mask).
    B2, D2 = 20, 128
    yp2 = jax.random.normal(k3, (B2, D2), dtype=jnp.float32) * 2.0
    yp2 = yp2.at[5].set(yp2[5] * 0.02)
    yt2 = jax.random.normal(k4, (B2, D2), dtype=jnp.float32) * 2.0

    out2 = jax.block_until_ready(
        custom_loss(yp2, yt2, weight=0.01, threshold=1.0, max_rows_per_tile=8))
    ref2 = _reference_loss(yp2, yt2, weight=0.01, threshold=1.0)
    assert jnp.allclose(out2, ref2, rtol=1e-5, atol=1e-5), (out2, ref2)

    # Case 3: forced 2-way batch split (v7x-style parallel axis) with a ragged
    # split (n_blocks=3 over 2 splits -> exercises the clamped-block path).
    out3 = jax.block_until_ready(
        custom_loss(yp2, yt2, weight=0.01, threshold=1.0,
                    max_rows_per_tile=8, num_splits=2))
    assert jnp.allclose(out3, ref2, rtol=1e-5, atol=1e-5), (out3, ref2)

    print("KERNEL_OK")
</pallas_src>

<mosaic_0001>
module attributes {stable_mosaic.version = 11 : i64} {
  func.func @_custom_loss_kernel(%arg0: i32, %arg1: i32, %arg2: memref<8x128xf32, #tpu.memory_space<vmem>>, %arg3: memref<8x128xf32, #tpu.memory_space<vmem>>, %arg4: memref<1x1x1xf32, #tpu.memory_space<vmem>>, %arg5: memref<8x128xf32, #tpu.memory_space<vmem>>, %arg6: memref<8x1xf32, #tpu.memory_space<vmem>>) attributes {dimension_semantics = [#tpu.dimension_semantics<parallel>, #tpu.dimension_semantics<arbitrary>], iteration_bounds = array<i64: 1, 1>, scalar_prefetch = 0 : i64, scratch_operands = 2 : i64, tpu.core_type = #tpu.core_type<tc>, window_params = [{transform_indices = @transform_0, window_bounds = array<i64: 8, 128>}, {transform_indices = @transform_1, window_bounds = array<i64: 8, 128>}, {transform_indices = @transform_2, window_bounds = array<i64: 1, 1, 1>}]} {
    %c0_i32 = arith.constant 0 : i32
    %0 = arith.cmpi eq, %arg1, %c0_i32 : i32
    %1 = arith.extui %0 : i1 to i32
    %c0_i32_0 = arith.constant 0 : i32
    %2 = arith.cmpi ne, %1, %c0_i32_0 : i32
    scf.if %2 {
      %cst_22 = arith.constant 0.000000e+00 : f32
      %45 = vector.broadcast %cst_22 : f32 to vector<8x128xf32>
      %c0_23 = arith.constant 0 : index
      %c0_24 = arith.constant 0 : index
      %46 = vector.load %arg5[%c0_23, %c0_24] : memref<8x128xf32, #tpu.memory_space<vmem>>, vector<8x128xf32>
      tpu.vector_store %arg5[%c0_23, %c0_24], %45 {strides = array<i32>} : memref<8x128xf32, #tpu.memory_space<vmem>>, vector<8x128xf32>,
      %cst_25 = arith.constant 0.000000e+00 : f32
      %47 = vector.broadcast %cst_25 : f32 to vector<8x1xf32>
      %c0_26 = arith.constant 0 : index
      %c0_27 = arith.constant 0 : index
      %48 = vector.load %arg6[%c0_26, %c0_27] : memref<8x1xf32, #tpu.memory_space<vmem>>, vector<8x1xf32>
      tpu.vector_store %arg6[%c0_26, %c0_27], %47 {strides = array<i32>} : memref<8x1xf32, #tpu.memory_space<vmem>>, vector<8x1xf32>,
    } else {
    }
    %c0 = arith.constant 0 : index
    %c0_1 = arith.constant 0 : index
    %3 = vector.load %arg2[%c0, %c0_1] : memref<8x128xf32, #tpu.memory_space<vmem>>, vector<8x128xf32>
    %c0_2 = arith.constant 0 : index
    %c0_3 = arith.constant 0 : index
    %4 = vector.load %arg3[%c0_2, %c0_3] : memref<8x128xf32, #tpu.memory_space<vmem>>, vector<8x128xf32>
    %c1_i32 = arith.constant 1 : i32
    %5 = arith.muli %arg0, %c1_i32 : i32
    %6 = arith.addi %5, %arg1 : i32
    %c8_i32 = arith.constant 8 : i32
    %7 = arith.muli %6, %c8_i32 : i32
    %8 = tpu.iota {dimensions = array<i32: 0>} : vector<8x1xi32>
    %9 = vector.broadcast %7 : i32 to vector<8x1xi32>
    %10 = arith.addi %9, %8 : vector<8x1xi32>
    %c8_i32_4 = arith.constant 8 : i32
    %11 = vector.broadcast %c8_i32_4 : i32 to vector<8x1xi32>
    %12 = arith.cmpi slt, %10, %11 : vector<8x1xi32>
    %13 = arith.subf %3, %4 : vector<8x128xf32>
    %14 = arith.mulf %13, %13 : vector<8x128xf32>
    %cst = arith.constant 0.000000e+00 : f32
    %15 = vector.shape_cast %12 : vector<8x1xi1> to vector<8x1xi1>
    %16 = vector.broadcast %15 : vector<8x1xi1> to vector<8x128xi1>
    %17 = vector.broadcast %cst : f32 to vector<8x128xf32>
    %18 = arith.select %16, %14, %17 : vector<8x128xi1>, vector<8x128xf32>
    %c0_5 = arith.constant 0 : index
    %c0_6 = arith.constant 0 : index
    %19 = vector.load %arg5[%c0_5, %c0_6] : memref<8x128xf32, #tpu.memory_space<vmem>>, vector<8x128xf32>
    %20 = vector.shape_cast %18 : vector<8x128xf32> to vector<1x8x128xf32>
    %cst_7 = arith.constant dense<0.000000e+00> : vector<8x128xf32>
    %21 = vector.multi_reduction <add>, %20, %cst_7 [0] : vector<1x8x128xf32> to vector<8x128xf32>
    %22 = arith.addf %19, %21 : vector<8x128xf32>
    %c0_8 = arith.constant 0 : index
    %c0_9 = arith.constant 0 : index
    %23 = vector.load %arg5[%c0_8, %c0_9] : memref<8x128xf32, #tpu.memory_space<vmem>>, vector<8x128xf32>
    tpu.vector_store %arg5[%c0_8, %c0_9], %22 {strides = array<i32>} : memref<8x128xf32, #tpu.memory_space<vmem>>, vector<8x128xf32>,
    %cst_10 = arith.constant dense<0.000000e+00> : vector<8xf32>
    %24 = vector.multi_reduction <add>, %3, %cst_10 [1] : vector<8x128xf32> to vector<8xf32>
    %25 = vector.shape_cast %24 : vector<8xf32> to vector<8x1xf32>
    %26 = math.absf %3 : vector<8x128xf32>
    %cst_11 = arith.constant dense<0xFF800000> : vector<8xf32>
    %27 = vector.multi_reduction <maximumf>, %26, %cst_11 [1] : vector<8x128xf32> to vector<8xf32>
    %28 = vector.shape_cast %27 : vector<8xf32> to vector<8x1xf32>
    %cst_12 = arith.constant 1.000000e+02 : f32
    %29 = vector.broadcast %cst_12 : f32 to vector<8x1xf32>
    %30 = arith.subf %25, %29 : vector<8x1xf32>
    %31 = arith.mulf %30, %30 : vector<8x1xf32>
    %cst_13 = arith.constant 1.000000e+00 : f32
    %32 = vector.broadcast %cst_13 : f32 to vector<8x1xf32>
    %33 = arith.cmpf oge, %28, %32 : vector<8x1xf32>
    %34 = arith.andi %33, %12 : vector<8x1xi1>
    %cst_14 = arith.constant 0.000000e+00 : f32
    %35 = vector.broadcast %cst_14 : f32 to vector<8x1xf32>
    %36 = arith.select %34, %31, %35 : vector<8x1xi1>, vector<8x1xf32>
    %c0_15 = arith.constant 0 : index
    %c0_16 = arith.constant 0 : index
    %37 = vector.load %arg6[%c0_15, %c0_16] : memref<8x1xf32, #tpu.memory_space<vmem>>, vector<8x1xf32>
    %38 = vector.shape_cast %36 : vector<8x1xf32> to vector<1x8x1xf32>
    %cst_17 = arith.constant dense<0.000000e+00> : vector<8x1xf32>
    %39 = vector.multi_reduction <add>, %38, %cst_17 [0] : vector<1x8x1xf32> to vector<8x1xf32>
    %40 = arith.addf %37, %39 : vector<8x1xf32>
    %c0_18 = arith.constant 0 : index
    %c0_19 = arith.constant 0 : index
    %41 = vector.load %arg6[%c0_18, %c0_19] : memref<8x1xf32, #tpu.memory_space<vmem>>, vector<8x1xf32>
    tpu.vector_store %arg6[%c0_18, %c0_19], %40 {strides = array<i32>} : memref<8x1xf32, #tpu.memory_space<vmem>>, vector<8x1xf32>,
    %c0_i32_20 = arith.constant 0 : i32
    %42 = arith.cmpi eq, %arg1, %c0_i32_20 : i32
    %43 = arith.extui %42 : i1 to i32
    %c0_i32_21 = arith.constant 0 : i32
    %44 = arith.cmpi ne, %43, %c0_i32_21 : i32
    scf.if %44 {
      %c0_22 = arith.constant 0 : index
      %c0_23 = arith.constant 0 : index
      %45 = vector.load %arg5[%c0_22, %c0_23] : memref<8x128xf32, #tpu.memory_space<vmem>>, vector<8x128xf32>
      %46 = vector.shape_cast %45 : vector<8x128xf32> to vector<1x8x128xf32>
      %cst_24 = arith.constant dense<0.000000e+00> : vector<1xf32>
      %47 = vector.multi_reduction <add>, %46, %cst_24 [1, 2] : vector<1x8x128xf32> to vector<1xf32>
      %48 = vector.shape_cast %47 : vector<1xf32> to vector<1x1x1xf32>
      %49 = vector.extract %48[0, 0, 0] : f32 from vector<1x1x1xf32>
      %c0_25 = arith.constant 0 : index
      %c0_26 = arith.constant 0 : index
      %50 = vector.load %arg6[%c0_25, %c0_26] : memref<8x1xf32, #tpu.memory_space<vmem>>, vector<8x1xf32>
      %51 = vector.shape_cast %50 : vector<8x1xf32> to vector<1x8x1xf32>
      %cst_27 = arith.constant dense<0.000000e+00> : vector<1xf32>
      %52 = vector.multi_reduction <add>, %51, %cst_27 [1, 2] : vector<1x8x1xf32> to vector<1xf32>
      %53 = vector.shape_cast %52 : vector<1xf32> to vector<1x1x1xf32>
      %54 = vector.extract %53[0, 0, 0] : f32 from vector<1x1x1xf32>
      %cst_28 = arith.constant 9.765625E-4 : f32
      %55 = arith.mulf %49, %cst_28 : f32
      %cst_29 = arith.constant 0.00999999977 : f32
      %56 = arith.mulf %cst_29, %54 : f32
      %cst_30 = arith.constant 1.250000e-01 : f32
      %57 = arith.mulf %56, %cst_30 : f32
      %58 = arith.addf %55, %57 : f32
      %59 = vector.broadcast %58 : f32 to vector<1x1x1xf32>
      %c0_31 = arith.constant 0 : index
      %c0_32 = arith.constant 0 : index
      %c0_33 = arith.constant 0 : index
      %60 = vector.load %arg4[%c0_31, %c0_32, %c0_33] : memref<1x1x1xf32, #tpu.memory_space<vmem>>, vector<1x1x1xf32>
      tpu.vector_store %arg4[%c0_31, %c0_32, %c0_33], %59 {strides = array<i32>} : memref<1x1x1xf32, #tpu.memory_space<vmem>>, vector<1x1x1xf32>,
    } else {
    }
    return
  }
  func.func @transform_0(%arg0: i32, %arg1: i32) -> (i32, i32) {
    %c1_i32 = arith.constant 1 : i32
    %0 = arith.muli %arg0, %c1_i32 : i32
    %1 = arith.addi %0, %arg1 : i32
    %c0_i32 = arith.constant 0 : i32
    %c0_i32_0 = arith.constant 0 : i32
    return %1, %c0_i32 : i32, i32
  }
  func.func @transform_1(%arg0: i32, %arg1: i32) -> (i32, i32) {
    %c1_i32 = arith.constant 1 : i32
    %0 = arith.muli %arg0, %c1_i32 : i32
    %1 = arith.addi %0, %arg1 : i32
    %c0_i32 = arith.constant 0 : i32
    %c0_i32_0 = arith.constant 0 : i32
    return %1, %c0_i32 : i32, i32
  }
  func.func @transform_2(%arg0: i32, %arg1: i32) -> (i32, i32, i32) {
    %c0_i32 = arith.constant 0 : i32
    %c0_i32_0 = arith.constant 0 : i32
    %c0_i32_1 = arith.constant 0 : i32
    return %arg0, %c0_i32, %c0_i32_0 : i32, i32, i32
  }
}

</mosaic_0001>

<bundles_post_ra>
// kernel: tpu_custom_call.1
= control target key start
LH: loop header
LB: loop body
LE: loop exit
PB: predicated region body
PF: predicated region fallthrough
CT: control target
= control target key end

     0   :  { %7 = vsyncpa [#allocation5], 0  ;;  %s270_s0 = inlined_call_operand.hbm [shape: f32[8,128], index: 0, kind: input, shape index: {}]   ;;  %s271_s1 = inlined_call_operand.hbm [shape: f32[8,128], index: 1, kind: input, shape index: {}]   ;;  %s272_s2 = inlined_call_operand.hbm [shape: f32[1,1,1], index: 2, kind: output, shape index: {}]  }
   0x1   :  { %8 = vsyncpa [#allocation8], 0 }
   0x2   :  { %9 = vsyncpa [#allocation6], 0  ;;  %s212_s9 = smov [#allocation4]   ;;  %s213_s11 = smov [#allocation7]  }
   0x3   :  { %s19_s10 = sshll.u32 %s212_s9, 4  ;;  %s32_s12 = sshll.u32 %s213_s11, 4  ;;  %s20_s10 = int_to_ptr.vmem [resolvable:$true] %s19_s10  ;;  %s33_s12 = int_to_ptr.vmem [resolvable:$true] %s32_s12 }
   0x4   :  { %s140_s15 = scalar_lea.hbm %s270_s0, 128 }
   0x5   :  { %p141_p0 = scmp.ne.s32.totalorder %s270_s0, %s140_s15  ;;  %p144_p1 = scmp.lt.u32.totalorder %s140_s15, %s270_s0 }
   0x7   :  { %p146_p2 = pnand %p144_p1, %p141_p0 }
   0x9   :  { %149 = shalt.err (!%p146_p2)
}
   0xa   :  { %s150_s20 = scalar_lea.vmem %s20_s10, 128  ;;  %p155_p4 = scmp.lt.s32.totalorder %s20_s10, %s20_s10 }
   0xb   :  { %p151_p3 = scmp.ne.s32.totalorder %s20_s10, %s150_s20  ;;  %p156_p5 = scmp.lt.s32.totalorder %s150_s20, %s150_s20 }
   0xd   :  { %p157_p6 = por %p156_p5, %p155_p4 }
   0xf   :  { %p158_p7 = pnand %p157_p6, %p151_p3 }
  0x11   :  { %161 = shalt.err (!%p158_p7)
}
  0x12   :  { %22 = dma.hbm_to_vmem [thread:$0]  %s270_s0, 128, %s20_s10, [#allocation5]  }
  0x13   :  { %s162_s25 = scalar_lea.hbm %s271_s1, 128 }
  0x14   :  { %p163_p8 = scmp.ne.s32.totalorder %s271_s1, %s162_s25  ;;  %p166_p9 = scmp.lt.u32.totalorder %s162_s25, %s271_s1 }
  0x16   :  { %p168_p10 = pnand %p166_p9, %p163_p8 }
  0x18   :  { %171 = shalt.err (!%p168_p10)
}
  0x19   :  { %s172_s30 = scalar_lea.vmem %s33_s12, 128  ;;  %p177_p12 = scmp.lt.s32.totalorder %s33_s12, %s33_s12 }
  0x1a   :  { %p173_p11 = scmp.ne.s32.totalorder %s33_s12, %s172_s30  ;;  %p178_p13 = scmp.lt.s32.totalorder %s172_s30, %s172_s30 }
  0x1c   :  { %p179_p0 = por %p178_p13, %p177_p12 }
  0x1e   :  { %p180_p1 = pnand %p179_p0, %p173_p11 }
  0x20   :  { %183 = shalt.err (!%p180_p1)
}
  0x21   :  { %35 = dma.hbm_to_vmem [thread:$0]  %s271_s1, 128, %s33_s12, [#allocation8]  }
  0x22   :  { %206 = dma.done.wait [#allocation5], 128  }
  0x23   :  { %207 = vsyncadd [#allocation5], 4294967168 }
  0x24   :  { %208 = dma.done.wait [#allocation8], 128  }
  0x25   :  { %209 = vsyncadd [#allocation8], 4294967168  ;;  %v51_v0 = vld [vmem:[#allocation4] sm:$0xff]  ;;  %vm49_vm0 = vcmask 7168   ;;  %v214_v2 = vmov 0.0   ;;  %v52_v3 = vld [vmem:[#allocation7] sm:$0xff] }
  0x26   :  { %69 = vadd.xlane.f32.xlu0 %v51_v0  ;;  %v71_v1 = vand.u32 2147483647, %v51_v0  ;;  %50 = vst.msk [vmem:[#allocation3] sm:$0xff] %vm49_vm0, %v214_v2  ;;  %v60_v4 = vsub.f32 %v51_v0, %v52_v3  ;;  %s215_s8 = smov [#allocation9]   ;;  %vm113_vm2 = vcmask 0  }
  0x27   :  { %s121_s9 = sshll.u32 %s215_s8, 4  ;;  %s122_s9 = int_to_ptr.vmem [resolvable:$true] %s121_s9 }
  0x28   :  { %v61_v5 = vmul.f32 %v60_v4, %v60_v4  ;;  %s184_s11 = scalar_lea.vmem %s122_s9, 16  ;;  %s188_s12 = scalar_lea.vmem %s122_s9, 32 }
  0x29   :  { %p185_p2 = scmp.ne.s32.totalorder %s122_s9, %s184_s11  ;;  %p189_p3 = scmp.lt.s32.totalorder %s122_s9, %s122_s9 }
  0x2a   :  { %72 = vmax.xlane.f32.xlu0 %v71_v1  ;;  %88 = vadd.xlane.f32.xlu1 %v61_v5  ;;  %p190_p4 = scmp.lt.s32.totalorder %s188_s12, %s184_s11 }
  0x2c   :  { %p191_p5 = por %p190_p4, %p189_p3 }
  0x2d   :  { %v79_v10 = vld [vmem:[#allocation3] sm:$0xff] }
  0x2e   :  { %p192_p6 = pnand %p191_p5, %p185_p2 }
  0xb3   :  { %v70_v6 = vpop.xlane.xlu0 %69 }
  0xb4   :  { %v131_v7 = vadd.f32 -100.0, %v70_v6 }
  0xb6   :  { %v75_v8 = vmul.f32 %v131_v7, %v131_v7 }
  0xb7   :  { %v73_v9 = vpop.xlane.xlu0 %72  ;;  %v89_v15 = vpop.xlane.xlu1 %88 }
  0xb8   :  { %vm76_vm1 = vcmp.ge.f32.partialorder %v73_v9, 1.0  ;;  %v90_v16 = vrot.slane %v89_v15, 4 }
  0xb9   :  { %v78_v11 = vsel %vm76_vm1, %v75_v8, 0.0 }
  0xba   :  { %v81_v12 = vadd.f32 %v79_v10, %v78_v11  ;;  %v91_v17 = vadd.f32 %v90_v16, %v89_v15 }
  0xbc   :  { %83 = vst.msk [vmem:[#allocation3] sm:$0xff] %vm49_vm0, %v81_v12  ;;  %v92_v18 = vrot.slane %v91_v17, 2 }
  0xbe   :  { %v93_v19 = vadd.f32 %v92_v18, %v91_v17 }
  0xc0   :  { %v94_v20 = vrot.slane %v93_v19, 1 }
  0xc2   :  { %v95_v21 = vadd.f32 %v94_v20, %v93_v19 }
  0xc3   :  { %v97_v13 = vld [vmem:[#allocation3] sm:$0xff] }
  0xc4   :  { %v98_v14 = vsel %vm49_vm0, %v97_v13, 0.0  ;;  %132 = vpush %v95_v21 }
  0xc5   :  { %99 = vadd.xlane.f32.xlu1 %v98_v14 }
  0xf5   :  { %s133_s1 = spop %132 }
  0xf6   :  { %s108_s6 = smul.f32 0.0009765625, %s133_s1 }
 0x152   :  { %v100_v22 = vpop.xlane.xlu1 %99 }
 0x153   :  { %v101_v23 = vrot.slane %v100_v22, 4 }
 0x155   :  { %v102_v24 = vadd.f32 %v101_v23, %v100_v22 }
 0x157   :  { %v103_v25 = vrot.slane %v102_v24, 2 }
 0x159   :  { %v104_v26 = vadd.f32 %v103_v25, %v102_v24 }
 0x15b   :  { %v105_v27 = vrot.slane %v104_v26, 1 }
 0x15d   :  { %v106_v28 = vadd.f32 %v105_v27, %v104_v26 }
 0x15f   :  { %134 = vpush %v106_v28 }
 0x190   :  { %s135_s4 = spop %134 }
 0x191   :  { %s109_s5 = smul.f32 0.01, %s135_s4 }
 0x193   :  { %s110_s7 = smul.f32 0.125, %s109_s5 }
 0x195   :  { %s111_s10 = sadd.f32 %s110_s7, %s108_s6 }
 0x197   :  { %v112_v29 = vstv %s111_s10 }
 0x198   :  { %114 = vst.msk [vmem:[#allocation9] sm:$0x1] %vm113_vm2, %v112_v29 }
 0x199   :  { %195 = shalt.err (!%p192_p6)
}
 0x19a   :  { %s196_s15 = scalar_lea.hbm %s272_s2, 16 }
 0x19b   :  { %p197_p7 = scmp.ne.s32.totalorder %s272_s2, %s196_s15  ;;  %p200_p8 = scmp.lt.u32.totalorder %s196_s15, %s272_s2 }
 0x19d   :  { %p202_p9 = pnand %p200_p8, %p197_p7 }
 0x19f   :  { %205 = shalt.err (!%p202_p9)
}
 0x1a0   :  { %124 = dma.vmem_to_hbm [thread:$0]  %s122_s9, 16, %s272_s2, [#allocation6]  }
 0x1a1   :  { %210 = dma.done.wait [#allocation6], 16  }
 0x1a2   :  { %211 = vsyncadd [#allocation6], 4294967280 }
 0x1a3   :  { %128 = vsyncpa [#allocation5], 1 }
 0x1a4   :  { %129 = vsyncpa [#allocation8], 1 }
 0x1a5   :  { %130 = vsyncpa [#allocation6], 1 }

</bundles_post_ra>
